<compile_context>
chip_gen: v7x
topology: tpu7x:2x2x1
jax: 0.10.0
libtpu: 0.0.40
codegen_flags: <defaults>
</compile_context>

<pallas_src>
import functools

import jax
import jax.numpy as jnp
from jax import lax
from jax.experimental import pallas as pl
from jax.experimental.pallas import tpu as pltpu


def _round_up(x: int, m: int) -> int:
    return ((x + m - 1) // m) * m


def linear_kernel(x_ref, w_ref, b_ref, o_ref):
    # x_ref: (TM, D_in)   w_ref: (D_out_p, D_in)   b_ref: (1, D_out_p)
    x = x_ref[...]
    w = w_ref[...]
    b = b_ref[...]
    # Contract x's dim 1 with w's dim 1  ==  x @ w.T, done natively on the MXU
    # (no materialized transpose), accumulating in f32.
    acc = lax.dot_general(
        x, w,
        dimension_numbers=(((1,), (1,)), ((), ())),
        preferred_element_type=jnp.float32,
    )
    o_ref[...] = (acc + b).astype(o_ref.dtype)


@functools.partial(jax.jit, static_argnames=("block_m",))
def logistic_regression_forward(x, weight, bias, *, block_m: int = 512):
    """x: (B, D_in), weight: (D_out, D_in) (PyTorch layout), bias: (D_out,)
    -> (B, D_out) == x @ weight.T + bias  (no sigmoid, matching the module)."""
    B, D_in = x.shape
    D_out = weight.shape[0]

    # ---- layout plumbing (plain JAX, zero-copy where possible) ----
    # Lane-dense output: pad D_out up to a multiple of 128.
    d_out_p = _round_up(D_out, 128)
    # Batch tile: at most `block_m` rows, sublane-aligned (multiple of 8).
    tm = min(block_m, _round_up(B, 8))
    b_p = _round_up(B, tm)

    x_p = x if b_p == B else jnp.pad(x, ((0, b_p - B), (0, 0)))
    w_p = weight if d_out_p == D_out else jnp.pad(weight, ((0, d_out_p - D_out), (0, 0)))
    bias_p = bias if d_out_p == D_out else jnp.pad(bias, (0, d_out_p - D_out))
    bias2 = bias_p.reshape(1, d_out_p)

    grid = (b_p // tm,)

    itemsize = x.dtype.itemsize
    cost = pl.CostEstimate(
        flops=2 * b_p * D_in * d_out_p,
        transcendentals=0,
        bytes_accessed=(b_p * D_in + d_out_p * D_in + d_out_p + b_p * d_out_p) * itemsize,
    )

    out_p = pl.pallas_call(
        linear_kernel,
        out_shape=jax.ShapeDtypeStruct((b_p, d_out_p), x.dtype),
        grid_spec=pl.GridSpec(
            grid=grid,
            in_specs=[
                # x tile streams along the batch grid axis.
                pl.BlockSpec((tm, D_in), lambda i: (i, 0)),
                # weight / bias stay resident in VMEM (same block every step).
                pl.BlockSpec((d_out_p, D_in), lambda i: (0, 0)),
                pl.BlockSpec((1, d_out_p), lambda i: (0, 0)),
            ],
            out_specs=pl.BlockSpec((tm, d_out_p), lambda i: (i, 0)),
        ),
        compiler_params=pltpu.CompilerParams(
            # Batch grid axis is embarrassingly parallel -> 2 TCs on v7x.
            dimension_semantics=("parallel",),
        ),
        cost_estimate=cost,
    )(x_p, w_p, bias2)

    # Slice off batch / lane padding.
    return out_p[:B, :D_out]


if __name__ == "__main__":
    # Small shapes consistent with the module: batch=8, input_dim=32, output_dim=16.
    batch, input_dim, output_dim = 8, 32, 16

    key = jax.random.PRNGKey(0)
    kx, kw, kb = jax.random.split(key, 3)

    x = jax.random.normal(kx, (batch, input_dim), dtype=jnp.float32)
    # Deterministic parameter init (mimics nn.Linear's uniform(-1/sqrt(fan_in), ...)).
    bound = 1.0 / (input_dim ** 0.5)
    weight = jax.random.uniform(kw, (output_dim, input_dim), dtype=jnp.float32,
                                minval=-bound, maxval=bound)
    bias = jax.random.uniform(kb, (output_dim,), dtype=jnp.float32,
                              minval=-bound, maxval=bound)

    out = logistic_regression_forward(x, weight, bias)
    out = jax.block_until_ready(out)

    # Correctness check against plain-JAX reference (module returns the affine output;
    # no sigmoid in the PyTorch forward).
    ref = x @ weight.T + bias
    assert out.shape == (batch, output_dim)
    assert jnp.allclose(out, ref, atol=1e-5, rtol=1e-5)

    print("KERNEL_OK")
</pallas_src>

<mosaic_0001>
module attributes {stable_mosaic.version = 11 : i64} {
  func.func @linear_kernel(%arg0: i32, %arg1: memref<8x32xf32, #tpu.memory_space<vmem>>, %arg2: memref<128x32xf32, #tpu.memory_space<vmem>>, %arg3: memref<1x128xf32, #tpu.memory_space<vmem>>, %arg4: memref<8x128xf32, #tpu.memory_space<vmem>>) attributes {dimension_semantics = [#tpu.dimension_semantics<parallel>], iteration_bounds = array<i64: 1>, scalar_prefetch = 0 : i64, scratch_operands = 0 : i64, tpu.core_type = #tpu.core_type<tc>, window_params = [{transform_indices = @transform_0, window_bounds = array<i64: 8, 32>}, {pipeline_mode = #tpu.pipeline_mode<synchronous>, transform_indices = @transform_1, window_bounds = array<i64: 128, 32>}, {pipeline_mode = #tpu.pipeline_mode<synchronous>, transform_indices = @transform_2, window_bounds = array<i64: 1, 128>}, {transform_indices = @transform_3, window_bounds = array<i64: 8, 128>}]} {
    %c0 = arith.constant 0 : index
    %c0_0 = arith.constant 0 : index
    %0 = vector.load %arg1[%c0, %c0_0] : memref<8x32xf32, #tpu.memory_space<vmem>>, vector<8x32xf32>
    %c0_1 = arith.constant 0 : index
    %c0_2 = arith.constant 0 : index
    %1 = vector.load %arg2[%c0_1, %c0_2] : memref<128x32xf32, #tpu.memory_space<vmem>>, vector<128x32xf32>
    %c0_3 = arith.constant 0 : index
    %c0_4 = arith.constant 0 : index
    %2 = vector.load %arg3[%c0_3, %c0_4] : memref<1x128xf32, #tpu.memory_space<vmem>>, vector<1x128xf32>
    %cst = arith.constant dense<0.000000e+00> : vector<8x128xf32>
    %3 = tpu.matmul %0, %1, %cst {dimension_numbers = #tpu.dot_dimension_numbers<[1], [1], [0], [0], [0, 0, 1, 0], [], []>} : vector<8x32xf32>, vector<128x32xf32>, vector<8x128xf32> -> vector<8x128xf32>
    %4 = vector.broadcast %2 : vector<1x128xf32> to vector<8x128xf32>
    %5 = arith.addf %3, %4 : vector<8x128xf32>
    %c0_5 = arith.constant 0 : index
    %c0_6 = arith.constant 0 : index
    %6 = vector.load %arg4[%c0_5, %c0_6] : memref<8x128xf32, #tpu.memory_space<vmem>>, vector<8x128xf32>
    tpu.vector_store %arg4[%c0_5, %c0_6], %5 {strides = array<i32>} : memref<8x128xf32, #tpu.memory_space<vmem>>, vector<8x128xf32>,
    return
  }
  func.func @transform_0(%arg0: i32) -> (i32, i32) {
    %c0_i32 = arith.constant 0 : i32
    %c0_i32_0 = arith.constant 0 : i32
    return %arg0, %c0_i32 : i32, i32
  }
  func.func @transform_1(%arg0: i32) -> (i32, i32) {
    %c0_i32 = arith.constant 0 : i32
    %c0_i32_0 = arith.constant 0 : i32
    %c0_i32_1 = arith.constant 0 : i32
    return %c0_i32, %c0_i32_0 : i32, i32
  }
  func.func @transform_2(%arg0: i32) -> (i32, i32) {
    %c0_i32 = arith.constant 0 : i32
    %c0_i32_0 = arith.constant 0 : i32
    %c0_i32_1 = arith.constant 0 : i32
    return %c0_i32, %c0_i32_0 : i32, i32
  }
  func.func @transform_3(%arg0: i32) -> (i32, i32) {
    %c0_i32 = arith.constant 0 : i32
    %c0_i32_0 = arith.constant 0 : i32
    return %arg0, %c0_i32 : i32, i32
  }
}

</mosaic_0001>

<bundles_post_ra>
// kernel: logistic_regression_forward.1
= control target key start
LH: loop header
LB: loop body
LE: loop exit
PB: predicated region body
PF: predicated region fallthrough
CT: control target
= control target key end

     0   :  { %vm39_vm0 = vcmask 261120   ;;  %v306_v2 = vmov 0.0|0.0   ;;  %vm307_vm2 = vmmov 0   ;;  %v308_v5 = vmov 0.0   ;;  %s419_s0 = inlined_call_operand.vmem [shape: f32[8,32], index: 0, kind: input, shape index: {}]   ;;  %s420_s1 = inlined_call_operand.vmem [shape: f32[128,32], index: 1, kind: input, shape index: {}]   ;;  %s421_s2 = inlined_call_operand.vmem [shape: f32[1,128], index: 2, kind: input, shape index: {}]   ;;  %s422_s3 = inlined_call_operand.hbm [shape: f32[8,128], index: 3, kind: output, shape index: {}]  }
   0x1   :  { %v16_v0 = vld [vmem:[%s420_s1] sm:$0xff]  ;;  %v17_v1 = vld [vmem:[%s420_s1 + $0x8] sm:$0xff]  ;;  %246 = vmatprep.subr.bf16.mxu0 %v306_v2  ;;  %vm338_vm1 = vmpackc.low %vm39_vm0, %vm39_vm0  ;;  %243 = vmatprep.mubr.msk.f32.mxu0 %vm307_vm2, %v308_v5 }
   0x2   :  { %v247_v3 = vpack.c.bf16 %v17_v1, %v16_v0  ;;  %v18_v6 = vld [vmem:[%s420_s1 + $0x10] sm:$0xff]  ;;  %v19_v7 = vld [vmem:[%s420_s1 + $0x18] sm:$0xff] }
   0x4   :  { %249 = vmatpush3.bf16.xpose.msk.msra.mxu0 %vm338_vm1, %v247_v3 }
   0x5   :  { %250 = vmatprep.subr.bf16.mxu0 %v306_v2 }
   0x6   :  { %8 = vsyncpa [#allocation3], 0  ;;  %v251_v8 = vpack.c.bf16 %v19_v7, %v18_v6  ;;  %v20_v9 = vld [vmem:[%s420_s1 + $0x20] sm:$0xff]  ;;  %v21_v10 = vld [vmem:[%s420_s1 + $0x28] sm:$0xff]  ;;  %s309_s21 = smov [#allocation2]  }
   0x7   :  { %v255_v11 = vpack.c.bf16 %v21_v10, %v20_v9  ;;  %v22_v12 = vld [vmem:[%s420_s1 + $0x30] sm:$0xff]  ;;  %v23_v13 = vld [vmem:[%s420_s1 + $0x38] sm:$0xff]  ;;  %v24_v15 = vld [vmem:[%s420_s1 + $0x40] sm:$0xff]  ;;  %s168_s22 = sshll.u32 %s309_s21, 4  ;;  %s169_s22 = int_to_ptr.vmem [resolvable:$true] %s168_s22 }
   0x8   :  { %v259_v14 = vpack.c.bf16 %v23_v13, %v22_v12  ;;  %v25_v16 = vld [vmem:[%s420_s1 + $0x48] sm:$0xff]  ;;  %v26_v18 = vld [vmem:[%s420_s1 + $0x50] sm:$0xff]  ;;  %v27_v19 = vld [vmem:[%s420_s1 + $0x58] sm:$0xff]  ;;  %p287_p1 = scmp.lt.s32.totalorder %s169_s22, %s169_s22 }
   0x9   :  { %v263_v17 = vpack.c.bf16 %v25_v16, %v24_v15  ;;  %v267_v20 = vpack.c.bf16 %v27_v19, %v26_v18  ;;  %v28_v21 = vld [vmem:[%s420_s1 + $0x60] sm:$0xff]  ;;  %v29_v22 = vld [vmem:[%s420_s1 + $0x68] sm:$0xff]  ;;  %v30_v24 = vld [vmem:[%s420_s1 + $0x70] sm:$0xff] }
   0xa   :  { %v271_v23 = vpack.c.bf16 %v29_v22, %v28_v21  ;;  %v31_v25 = vld [vmem:[%s420_s1 + $0x78] sm:$0xff]  ;;  %v15_v27 = vld [vmem:[%s419_s0] sm:$0xff]  ;;  %s282_s1 = scalar_lea.vmem %s169_s22, 128 }
   0xb   :  { %v275_v26 = vpack.c.bf16 %v31_v25, %v30_v24  ;;  %v176_v28 = vld [vmem:[%s421_s2] ss:$0 sm:$0xff]  ;;  %p283_p0 = scmp.ne.s32.totalorder %s169_s22, %s282_s1  ;;  %p288_p2 = scmp.lt.s32.totalorder %s282_s1, %s282_s1 }
   0xc   :  { %253 = vmatpush3.bf16.xpose.msk.msra.mxu0 %vm338_vm1, %v251_v8 }
   0xd   :  { %254 = vmatprep.subr.bf16.mxu0 %v306_v2  ;;  %p289_p3 = por %p288_p2, %p287_p1 }
   0xf   :  { %p290_p4 = pnand %p289_p3, %p283_p0 }
  0x14   :  { %257 = vmatpush3.bf16.xpose.msk.msra.mxu0 %vm338_vm1, %v255_v11 }
  0x15   :  { %258 = vmatprep.subr.bf16.mxu0 %v306_v2 }
  0x1c   :  { %261 = vmatpush3.bf16.xpose.msk.msra.mxu0 %vm338_vm1, %v259_v14 }
  0x1d   :  { %262 = vmatprep.subr.bf16.mxu0 %v306_v2 }
  0x24   :  { %265 = vmatpush3.bf16.xpose.msk.msra.mxu0 %vm338_vm1, %v263_v17 }
  0x25   :  { %266 = vmatprep.subr.bf16.mxu0 %v306_v2 }
  0x2c   :  { %269 = vmatpush3.bf16.xpose.msk.msra.mxu0 %vm338_vm1, %v267_v20 }
  0x2d   :  { %270 = vmatprep.subr.bf16.mxu0 %v306_v2 }
  0x34   :  { %273 = vmatpush3.bf16.xpose.msk.msra.mxu0 %vm338_vm1, %v271_v23 }
  0x35   :  { %274 = vmatprep.subr.bf16.mxu0 %v306_v2 }
  0x3c   :  { %277 = vmatpush3.bf16.xpose.msk.msra.mxu0 %vm338_vm1, %v275_v26 }
  0x43   :  { %244 = vmatmul.mubr.msk.f32.vlgmr.msra.gmra.mrb[0].mxu0 %vm39_vm0, %v15_v27 }
 0x116   :  { %v157_v29 = vpop.f32.mrb[0].mxu0 }
 0x117   :  { %v158_v30 = vadd.f32 %v176_v28, %v157_v29  ;;  %v245_v31 = vpop.f32.mrb[1].mxu0 }
 0x119   :  { %161 = vst [vmem:[#allocation2] sm:$0xff] %v158_v30 }
 0x11a   :  { %293 = shalt.err (!%p290_p4)
}
 0x11b   :  { %s294_s24 = scalar_lea.hbm %s422_s3, 128 }
 0x11c   :  { %p295_p5 = scmp.ne.s32.totalorder %s422_s3, %s294_s24  ;;  %p298_p6 = scmp.lt.u32.totalorder %s294_s24, %s422_s3 }
 0x11e   :  { %p300_p7 = pnand %p298_p6, %p295_p5 }
 0x120   :  { %303 = shalt.err (!%p300_p7)
}
 0x121   :  { %171 = dma.vmem_to_hbm [thread:$0]  %s169_s22, 128, %s422_s3, [#allocation3]  }
 0x122   :  { %304 = dma.done.wait [#allocation3], 128  }
 0x123   :  { %305 = vsyncadd [#allocation3], 4294967168 }
 0x124   :  { %175 = vsyncpa [#allocation3], 1 }

</bundles_post_ra>
